<compile_context>
chip_gen: v5e
topology: v5e:2x2
jax: 0.10.0
libtpu: 0.0.40
codegen_flags: <defaults>
</compile_context>

<pallas_src>
import jax
import jax.numpy as jnp
from jax.experimental import pallas as pl
from jax.experimental.pallas import tpu as pltpu


def cartpole_kernel(xc_ref, w1_ref, w2_ref, fw1_ref, pk_ref, o_ref, p_ref):
    """Whole forward pass for the full batch in one invocation.

    xc_ref : (L*B, 5*Cin)  conv1 im2col, rows = even positions (l2-major, l2*B+b)
                           for the first half, odd positions for the second half
    w1_ref : (5*Cin, 32)   conv1 weight, row index k*Cin + c
    w2_ref : (96, 64)      conv2 weight, row index k*32 + c
    fw1_ref: (L2*64, 64)   fc1 weight, row index l*64 + c (matches torch c*L2+l flatten)
    pk_ref : (5, 64)       packed [b1(pad to 64), b2, fb1, fc2_w, fb2(lane 0)]
    o_ref  : (B, 1)        sigmoid output
    p_ref  : ((L2+2)*B, 32) scratch: pooled conv1 output, B zero rows front/back
    """
    B = o_ref.shape[0]
    LB = xc_ref.shape[0]           # L * B
    L2B = LB // 2                  # L2 * B
    C1 = w1_ref.shape[1]           # 32
    C2 = w2_ref.shape[1]           # 64
    L2 = fw1_ref.shape[0] // C2

    b1 = pk_ref[0:1, 0:C1]
    b2 = pk_ref[1:2, :]
    fb1 = pk_ref[2:3, :]
    fw2 = pk_ref[3:4, :]
    fb2 = pk_ref[4:5, 0:1]

    # ---- conv1: one MXU matmul for the whole batch + bias + ReLU -----------
    y1 = jnp.dot(xc_ref[...], w1_ref[...], preferred_element_type=jnp.float32)
    y1 = jnp.maximum(y1 + b1, 0.0)                       # (L*B, 32)

    # ---- MaxPool1d(2): even half vs odd half (contiguous register slices) ---
    pooled = jnp.maximum(y1[0:L2B, :], y1[L2B:LB, :])    # (L2*B, 32), rows l2*B+b

    # Zero-padded pooled scratch: conv2 pad=1 neighbours become contiguous
    # slices, and the zero rows also isolate samples at the sequence edges.
    p_ref[...] = jnp.zeros_like(p_ref)
    p_ref[B:B + L2B, :] = pooled
    left = p_ref[0:L2B, :]                               # pooled[l2-1] (zeros at l2==0)
    right = p_ref[2 * B:2 * B + L2B, :]                  # pooled[l2+1] (zeros at l2==L2-1)

    # ---- conv2: register-accumulated matmuls against static w2 slices -------
    y2 = (jnp.dot(left, w2_ref[0:C1, :], preferred_element_type=jnp.float32)
          + jnp.dot(pooled, w2_ref[C1:2 * C1, :], preferred_element_type=jnp.float32)
          + jnp.dot(right, w2_ref[2 * C1:3 * C1, :], preferred_element_type=jnp.float32))
    y2 = jnp.maximum(y2 + b2, 0.0)                       # (L2*B, 64)

    # ---- fc1: accumulate over positions, no flatten scratch -----------------
    h = jnp.zeros((B, C2), jnp.float32) + fb1
    for l in range(L2):
        h = h + jnp.dot(y2[l * B:(l + 1) * B, :],
                        fw1_ref[l * C2:(l + 1) * C2, :],
                        preferred_element_type=jnp.float32)
    h = jnp.maximum(h, 0.0)                              # (B, 64)

    # ---- fc2 + sigmoid: broadcast-mul + lane reduce (skip N=1 MXU pass) -----
    logit = jnp.sum(h * fw2, axis=-1, keepdims=True) + fb2
    o_ref[...] = jax.nn.sigmoid(logit)


def prepare_params(params):
    """One-time parameter re-layout (hoisted out of the per-call path)."""
    C1, C2, K1, K2 = 32, 64, 5, 3
    Cin = params["conv1_w"].shape[1]
    L2 = params["fc1_w"].shape[1] // C2

    # conv weights as (k*Cin + c, out) matmul matrices
    w1 = jnp.transpose(params["conv1_w"], (2, 1, 0)).reshape(K1 * Cin, C1)   # (20, 32)
    w2 = jnp.transpose(params["conv2_w"], (2, 1, 0)).reshape(K2 * C1, C2)    # (96, 64)
    # torch Flatten order is c*L2 + l; kernel consumes rows l*64 + c:
    # fw1[l*64 + c, o] = fc1_w[o, c*L2 + l]
    fw1 = jnp.transpose(params["fc1_w"].reshape(C2, C2, L2),
                        (2, 1, 0)).reshape(L2 * C2, C2)                      # (L2*64, 64)
    # Pack all the tiny vectors into a single (5, 64) slab (one DMA).
    pk = jnp.zeros((5, C2), jnp.float32)
    pk = pk.at[0, :C1].set(params["conv1_b"])
    pk = pk.at[1, :].set(params["conv2_b"])
    pk = pk.at[2, :].set(params["fc1_b"])
    pk = pk.at[3, :].set(params["fc2_w"].reshape(C2))
    pk = pk.at[4, 0].set(params["fc2_b"].reshape(()))
    return {"w1": w1, "w2": w2, "fw1": fw1, "pk": pk}


@jax.jit
def cartpole_forward(x, prepped):
    """x: (B, L, Cin) float32 — same layout the PyTorch module receives."""
    B, L, Cin = x.shape
    assert L % 2 == 0, "MaxPool1d(2) layout assumes an even length"
    L2 = L // 2
    K1, C1, C2 = 5, 32, 64

    # im2col for conv1 in l-major order, even positions first then odd, so the
    # kernel's maxpool/neighbour accesses are all contiguous row slices.
    x_pad = jnp.pad(x, ((0, 0), (2, 2), (0, 0)))                            # (B, L+4, Cin)
    x_col = jnp.concatenate([x_pad[:, k:k + L, :] for k in range(K1)],
                            axis=-1)                                        # (B, L, 5*Cin)
    x_col = jnp.transpose(x_col, (1, 0, 2))                                 # (L, B, 5*Cin)
    x_col = jnp.concatenate([x_col[0::2], x_col[1::2]], axis=0)             # even | odd
    x_col = x_col.reshape(L * B, K1 * Cin)                                  # (L*B, 20)

    w1, w2, fw1, pk = prepped["w1"], prepped["w2"], prepped["fw1"], prepped["pk"]

    flops = 2 * (L * B * (K1 * Cin) * C1 + 3 * L2 * B * C1 * C2
                 + B * L2 * C2 * C2 + B * C2)
    bytes_accessed = 4 * (x_col.size + w1.size + w2.size + fw1.size + pk.size + B)

    vmem = pl.BlockSpec(memory_space=pltpu.MemorySpace.VMEM)
    return pl.pallas_call(
        cartpole_kernel,
        out_shape=jax.ShapeDtypeStruct((B, 1), jnp.float32),
        in_specs=[vmem] * 5,
        out_specs=vmem,
        scratch_shapes=[pltpu.VMEM(((L2 + 2) * B, C1), jnp.float32)],
        cost_estimate=pl.CostEstimate(flops=flops, transcendentals=B,
                                      bytes_accessed=bytes_accessed),
    )(x_col, w1, w2, fw1, pk)


def reference_forward(x, params):
    """Pure-JAX (XLA) reference matching PyTorch semantics exactly."""
    xp = jnp.transpose(x, (0, 2, 1))                                  # (B, Cin, L)
    y = jax.lax.conv_general_dilated(
        xp, params["conv1_w"], window_strides=(1,), padding=[(2, 2)],
        dimension_numbers=("NCH", "OIH", "NCH"))
    y = jax.nn.relu(y + params["conv1_b"][None, :, None])
    B, C, L = y.shape
    y = y.reshape(B, C, L // 2, 2).max(axis=-1)                        # MaxPool1d(2)
    y = jax.lax.conv_general_dilated(
        y, params["conv2_w"], window_strides=(1,), padding=[(1, 1)],
        dimension_numbers=("NCH", "OIH", "NCH"))
    y = jax.nn.relu(y + params["conv2_b"][None, :, None])
    y = y.reshape(B, -1)                                               # (B, 64*L2)
    y = jax.nn.relu(y @ params["fc1_w"].T + params["fc1_b"])
    y = jax.nn.sigmoid(y @ params["fc2_w"].T + params["fc2_b"])
    return y


if __name__ == "__main__":
    # Small shapes consistent with the module: batch=2, input_size=16, channels=4.
    B, L, Cin = 2, 16, 4
    L2 = L // 2

    key = jax.random.PRNGKey(0)
    ks = jax.random.split(key, 9)
    params = {
        "conv1_w": 0.2 * jax.random.normal(ks[0], (32, Cin, 5), jnp.float32),
        "conv1_b": 0.1 * jax.random.normal(ks[1], (32,), jnp.float32),
        "conv2_w": 0.1 * jax.random.normal(ks[2], (64, 32, 3), jnp.float32),
        "conv2_b": 0.1 * jax.random.normal(ks[3], (64,), jnp.float32),
        "fc1_w": 0.05 * jax.random.normal(ks[4], (64, 64 * L2), jnp.float32),
        "fc1_b": 0.1 * jax.random.normal(ks[5], (64,), jnp.float32),
        "fc2_w": 0.1 * jax.random.normal(ks[6], (1, 64), jnp.float32),
        "fc2_b": 0.1 * jax.random.normal(ks[7], (1,), jnp.float32),
    }
    x = jax.random.normal(ks[8], (B, L, Cin), jnp.float32)

    prepped = prepare_params(params)        # one-time weight re-layout (hoisted)

    out = cartpole_forward(x, prepped)
    out = jax.block_until_ready(out)

    ref = reference_forward(x, params)
    assert out.shape == (B, 1)
    assert jnp.allclose(out, ref, atol=2e-4, rtol=2e-4), (out, ref)

    print("KERNEL_OK")
</pallas_src>

<mosaic_0001>
module attributes {stable_mosaic.version = 11 : i64} {
  func.func @cartpole_kernel(%arg0: memref<32x20xf32, #tpu.memory_space<vmem>>, %arg1: memref<20x32xf32, #tpu.memory_space<vmem>>, %arg2: memref<96x64xf32, #tpu.memory_space<vmem>>, %arg3: memref<512x64xf32, #tpu.memory_space<vmem>>, %arg4: memref<5x64xf32, #tpu.memory_space<vmem>>, %arg5: memref<2x1xf32, #tpu.memory_space<vmem>>, %arg6: memref<20x32xf32, #tpu.memory_space<vmem>>) attributes {dimension_semantics = [], scalar_prefetch = 0 : i64, scratch_operands = 1 : i64, tpu.core_type = #tpu.core_type<tc>} {
    %c0 = arith.constant 0 : index
    %c0_0 = arith.constant 0 : index
    %0 = vector.load %arg4[%c0, %c0_0] : memref<5x64xf32, #tpu.memory_space<vmem>>, vector<1x32xf32>
    %c1 = arith.constant 1 : index
    %c0_1 = arith.constant 0 : index
    %1 = vector.load %arg4[%c1, %c0_1] : memref<5x64xf32, #tpu.memory_space<vmem>>, vector<1x64xf32>
    %c2 = arith.constant 2 : index
    %c0_2 = arith.constant 0 : index
    %2 = vector.load %arg4[%c2, %c0_2] : memref<5x64xf32, #tpu.memory_space<vmem>>, vector<1x64xf32>
    %c3 = arith.constant 3 : index
    %c0_3 = arith.constant 0 : index
    %3 = vector.load %arg4[%c3, %c0_3] : memref<5x64xf32, #tpu.memory_space<vmem>>, vector<1x64xf32>
    %c4 = arith.constant 4 : index
    %c0_4 = arith.constant 0 : index
    %4 = vector.load %arg4[%c4, %c0_4] : memref<5x64xf32, #tpu.memory_space<vmem>>, vector<1x1xf32>
    %c0_5 = arith.constant 0 : index
    %c0_6 = arith.constant 0 : index
    %5 = vector.load %arg0[%c0_5, %c0_6] : memref<32x20xf32, #tpu.memory_space<vmem>>, vector<32x20xf32>
    %c0_7 = arith.constant 0 : index
    %c0_8 = arith.constant 0 : index
    %6 = vector.load %arg1[%c0_7, %c0_8] : memref<20x32xf32, #tpu.memory_space<vmem>>, vector<20x32xf32>
    %cst = arith.constant dense<0.000000e+00> : vector<32x32xf32>
    %7 = tpu.matmul %5, %6, %cst {dimension_numbers = #tpu.dot_dimension_numbers<[1], [0], [0], [1], [0, 0, 1, 1], [], []>} : vector<32x20xf32>, vector<20x32xf32>, vector<32x32xf32> -> vector<32x32xf32>
    %8 = vector.broadcast %0 : vector<1x32xf32> to vector<32x32xf32>
    %9 = arith.addf %7, %8 : vector<32x32xf32>
    %cst_9 = arith.constant 0.000000e+00 : f32
    %10 = vector.broadcast %cst_9 : f32 to vector<32x32xf32>
    %11 = arith.maximumf %9, %10 : vector<32x32xf32>
    %12 = vector.extract_strided_slice %11 {offsets = [0, 0], sizes = [16, 32], strides = [1, 1]} : vector<32x32xf32> to vector<16x32xf32>
    %13 = vector.extract_strided_slice %11 {offsets = [16, 0], sizes = [16, 32], strides = [1, 1]} : vector<32x32xf32> to vector<16x32xf32>
    %14 = arith.maximumf %12, %13 : vector<16x32xf32>
    %cst_10 = arith.constant 0.000000e+00 : f32
    %15 = vector.broadcast %cst_10 : f32 to vector<20x32xf32>
    %c0_11 = arith.constant 0 : index
    %c0_12 = arith.constant 0 : index
    %16 = vector.load %arg6[%c0_11, %c0_12] : memref<20x32xf32, #tpu.memory_space<vmem>>, vector<20x32xf32>
    tpu.vector_store %arg6[%c0_11, %c0_12], %15 {strides = array<i32>} : memref<20x32xf32, #tpu.memory_space<vmem>>, vector<20x32xf32>,
    %c2_13 = arith.constant 2 : index
    %c0_14 = arith.constant 0 : index
    %17 = vector.load %arg6[%c2_13, %c0_14] : memref<20x32xf32, #tpu.memory_space<vmem>>, vector<16x32xf32>
    tpu.vector_store %arg6[%c2_13, %c0_14], %14 {strides = array<i32>} : memref<20x32xf32, #tpu.memory_space<vmem>>, vector<16x32xf32>,
    %c0_15 = arith.constant 0 : index
    %c0_16 = arith.constant 0 : index
    %18 = vector.load %arg6[%c0_15, %c0_16] : memref<20x32xf32, #tpu.memory_space<vmem>>, vector<16x32xf32>
    %c4_17 = arith.constant 4 : index
    %c0_18 = arith.constant 0 : index
    %19 = vector.load %arg6[%c4_17, %c0_18] : memref<20x32xf32, #tpu.memory_space<vmem>>, vector<16x32xf32>
    %c0_19 = arith.constant 0 : index
    %c0_20 = arith.constant 0 : index
    %20 = vector.load %arg2[%c0_19, %c0_20] : memref<96x64xf32, #tpu.memory_space<vmem>>, vector<32x64xf32>
    %cst_21 = arith.constant dense<0.000000e+00> : vector<16x64xf32>
    %21 = tpu.matmul %18, %20, %cst_21 {dimension_numbers = #tpu.dot_dimension_numbers<[1], [0], [0], [1], [0, 0, 1, 1], [], []>} : vector<16x32xf32>, vector<32x64xf32>, vector<16x64xf32> -> vector<16x64xf32>
    %c32 = arith.constant 32 : index
    %c0_22 = arith.constant 0 : index
    %22 = vector.load %arg2[%c32, %c0_22] : memref<96x64xf32, #tpu.memory_space<vmem>>, vector<32x64xf32>
    %cst_23 = arith.constant dense<0.000000e+00> : vector<16x64xf32>
    %23 = tpu.matmul %14, %22, %cst_23 {dimension_numbers = #tpu.dot_dimension_numbers<[1], [0], [0], [1], [0, 0, 1, 1], [], []>} : vector<16x32xf32>, vector<32x64xf32>, vector<16x64xf32> -> vector<16x64xf32>
    %24 = arith.addf %21, %23 : vector<16x64xf32>
    %c64 = arith.constant 64 : index
    %c0_24 = arith.constant 0 : index
    %25 = vector.load %arg2[%c64, %c0_24] : memref<96x64xf32, #tpu.memory_space<vmem>>, vector<32x64xf32>
    %cst_25 = arith.constant dense<0.000000e+00> : vector<16x64xf32>
    %26 = tpu.matmul %19, %25, %cst_25 {dimension_numbers = #tpu.dot_dimension_numbers<[1], [0], [0], [1], [0, 0, 1, 1], [], []>} : vector<16x32xf32>, vector<32x64xf32>, vector<16x64xf32> -> vector<16x64xf32>
    %27 = arith.addf %24, %26 : vector<16x64xf32>
    %28 = vector.broadcast %1 : vector<1x64xf32> to vector<16x64xf32>
    %29 = arith.addf %27, %28 : vector<16x64xf32>
    %cst_26 = arith.constant 0.000000e+00 : f32
    %30 = vector.broadcast %cst_26 : f32 to vector<16x64xf32>
    %31 = arith.maximumf %29, %30 : vector<16x64xf32>
    %cst_27 = arith.constant 0.000000e+00 : f32
    %32 = vector.broadcast %cst_27 : f32 to vector<2x64xf32>
    %33 = vector.broadcast %2 : vector<1x64xf32> to vector<2x64xf32>
    %34 = arith.addf %32, %33 : vector<2x64xf32>
    %35 = vector.extract_strided_slice %31 {offsets = [0, 0], sizes = [2, 64], strides = [1, 1]} : vector<16x64xf32> to vector<2x64xf32>
    %c0_28 = arith.constant 0 : index
    %c0_29 = arith.constant 0 : index
    %36 = vector.load %arg3[%c0_28, %c0_29] : memref<512x64xf32, #tpu.memory_space<vmem>>, vector<64x64xf32>
    %cst_30 = arith.constant dense<0.000000e+00> : vector<2x64xf32>
    %37 = tpu.matmul %35, %36, %cst_30 {dimension_numbers = #tpu.dot_dimension_numbers<[1], [0], [0], [1], [0, 0, 1, 1], [], []>} : vector<2x64xf32>, vector<64x64xf32>, vector<2x64xf32> -> vector<2x64xf32>
    %38 = arith.addf %34, %37 : vector<2x64xf32>
    %39 = vector.extract_strided_slice %31 {offsets = [2, 0], sizes = [2, 64], strides = [1, 1]} : vector<16x64xf32> to vector<2x64xf32>
    %c64_31 = arith.constant 64 : index
    %c0_32 = arith.constant 0 : index
    %40 = vector.load %arg3[%c64_31, %c0_32] : memref<512x64xf32, #tpu.memory_space<vmem>>, vector<64x64xf32>
    %cst_33 = arith.constant dense<0.000000e+00> : vector<2x64xf32>
    %41 = tpu.matmul %39, %40, %cst_33 {dimension_numbers = #tpu.dot_dimension_numbers<[1], [0], [0], [1], [0, 0, 1, 1], [], []>} : vector<2x64xf32>, vector<64x64xf32>, vector<2x64xf32> -> vector<2x64xf32>
    %42 = arith.addf %38, %41 : vector<2x64xf32>
    %43 = vector.extract_strided_slice %31 {offsets = [4, 0], sizes = [2, 64], strides = [1, 1]} : vector<16x64xf32> to vector<2x64xf32>
    %c128 = arith.constant 128 : index
    %c0_34 = arith.constant 0 : index
    %44 = vector.load %arg3[%c128, %c0_34] : memref<512x64xf32, #tpu.memory_space<vmem>>, vector<64x64xf32>
    %cst_35 = arith.constant dense<0.000000e+00> : vector<2x64xf32>
    %45 = tpu.matmul %43, %44, %cst_35 {dimension_numbers = #tpu.dot_dimension_numbers<[1], [0], [0], [1], [0, 0, 1, 1], [], []>} : vector<2x64xf32>, vector<64x64xf32>, vector<2x64xf32> -> vector<2x64xf32>
    %46 = arith.addf %42, %45 : vector<2x64xf32>
    %47 = vector.extract_strided_slice %31 {offsets = [6, 0], sizes = [2, 64], strides = [1, 1]} : vector<16x64xf32> to vector<2x64xf32>
    %c192 = arith.constant 192 : index
    %c0_36 = arith.constant 0 : index
    %48 = vector.load %arg3[%c192, %c0_36] : memref<512x64xf32, #tpu.memory_space<vmem>>, vector<64x64xf32>
    %cst_37 = arith.constant dense<0.000000e+00> : vector<2x64xf32>
    %49 = tpu.matmul %47, %48, %cst_37 {dimension_numbers = #tpu.dot_dimension_numbers<[1], [0], [0], [1], [0, 0, 1, 1], [], []>} : vector<2x64xf32>, vector<64x64xf32>, vector<2x64xf32> -> vector<2x64xf32>
    %50 = arith.addf %46, %49 : vector<2x64xf32>
    %51 = vector.extract_strided_slice %31 {offsets = [8, 0], sizes = [2, 64], strides = [1, 1]} : vector<16x64xf32> to vector<2x64xf32>
    %c256 = arith.constant 256 : index
    %c0_38 = arith.constant 0 : index
    %52 = vector.load %arg3[%c256, %c0_38] : memref<512x64xf32, #tpu.memory_space<vmem>>, vector<64x64xf32>
    %cst_39 = arith.constant dense<0.000000e+00> : vector<2x64xf32>
    %53 = tpu.matmul %51, %52, %cst_39 {dimension_numbers = #tpu.dot_dimension_numbers<[1], [0], [0], [1], [0, 0, 1, 1], [], []>} : vector<2x64xf32>, vector<64x64xf32>, vector<2x64xf32> -> vector<2x64xf32>
    %54 = arith.addf %50, %53 : vector<2x64xf32>
    %55 = vector.extract_strided_slice %31 {offsets = [10, 0], sizes = [2, 64], strides = [1, 1]} : vector<16x64xf32> to vector<2x64xf32>
    %c320 = arith.constant 320 : index
    %c0_40 = arith.constant 0 : index
    %56 = vector.load %arg3[%c320, %c0_40] : memref<512x64xf32, #tpu.memory_space<vmem>>, vector<64x64xf32>
    %cst_41 = arith.constant dense<0.000000e+00> : vector<2x64xf32>
    %57 = tpu.matmul %55, %56, %cst_41 {dimension_numbers = #tpu.dot_dimension_numbers<[1], [0], [0], [1], [0, 0, 1, 1], [], []>} : vector<2x64xf32>, vector<64x64xf32>, vector<2x64xf32> -> vector<2x64xf32>
    %58 = arith.addf %54, %57 : vector<2x64xf32>
    %59 = vector.extract_strided_slice %31 {offsets = [12, 0], sizes = [2, 64], strides = [1, 1]} : vector<16x64xf32> to vector<2x64xf32>
    %c384 = arith.constant 384 : index
    %c0_42 = arith.constant 0 : index
    %60 = vector.load %arg3[%c384, %c0_42] : memref<512x64xf32, #tpu.memory_space<vmem>>, vector<64x64xf32>
    %cst_43 = arith.constant dense<0.000000e+00> : vector<2x64xf32>
    %61 = tpu.matmul %59, %60, %cst_43 {dimension_numbers = #tpu.dot_dimension_numbers<[1], [0], [0], [1], [0, 0, 1, 1], [], []>} : vector<2x64xf32>, vector<64x64xf32>, vector<2x64xf32> -> vector<2x64xf32>
    %62 = arith.addf %58, %61 : vector<2x64xf32>
    %63 = vector.extract_strided_slice %31 {offsets = [14, 0], sizes = [2, 64], strides = [1, 1]} : vector<16x64xf32> to vector<2x64xf32>
    %c448 = arith.constant 448 : index
    %c0_44 = arith.constant 0 : index
    %64 = vector.load %arg3[%c448, %c0_44] : memref<512x64xf32, #tpu.memory_space<vmem>>, vector<64x64xf32>
    %cst_45 = arith.constant dense<0.000000e+00> : vector<2x64xf32>
    %65 = tpu.matmul %63, %64, %cst_45 {dimension_numbers = #tpu.dot_dimension_numbers<[1], [0], [0], [1], [0, 0, 1, 1], [], []>} : vector<2x64xf32>, vector<64x64xf32>, vector<2x64xf32> -> vector<2x64xf32>
    %66 = arith.addf %62, %65 : vector<2x64xf32>
    %cst_46 = arith.constant 0.000000e+00 : f32
    %67 = vector.broadcast %cst_46 : f32 to vector<2x64xf32>
    %68 = arith.maximumf %66, %67 : vector<2x64xf32>
    %69 = vector.broadcast %3 : vector<1x64xf32> to vector<2x64xf32>
    %70 = arith.mulf %68, %69 : vector<2x64xf32>
    %cst_47 = arith.constant dense<0.000000e+00> : vector<2xf32>
    %71 = vector.multi_reduction <add>, %70, %cst_47 [1] : vector<2x64xf32> to vector<2xf32>
    %72 = vector.shape_cast %71 : vector<2xf32> to vector<2x1xf32>
    %73 = vector.broadcast %4 : vector<1x1xf32> to vector<2x1xf32>
    %74 = arith.addf %72, %73 : vector<2x1xf32>
    %75 = arith.negf %74 : vector<2x1xf32>
    %76 = math.exp %75 : vector<2x1xf32>
    %cst_48 = arith.constant 1.000000e+00 : f32
    %77 = vector.broadcast %cst_48 : f32 to vector<2x1xf32>
    %78 = arith.addf %77, %76 : vector<2x1xf32>
    %79 = arith.divf %77, %78 : vector<2x1xf32>
    %c0_49 = arith.constant 0 : index
    %c0_50 = arith.constant 0 : index
    %80 = vector.load %arg5[%c0_49, %c0_50] : memref<2x1xf32, #tpu.memory_space<vmem>>, vector<2x1xf32>
    tpu.vector_store %arg5[%c0_49, %c0_50], %79 {strides = array<i32>} : memref<2x1xf32, #tpu.memory_space<vmem>>, vector<2x1xf32>,
    return
  }
}

</mosaic_0001>

<bundles_post_ra>
// kernel: cartpole_forward.1
= control target key start
LH: loop header
LB: loop body
LE: loop exit
PB: predicated region body
PF: predicated region fallthrough
CT: control target
= control target key end

     0   :  { %vm46_vm0 = vcmask 1043456   ;;  %vm33_vm1 = vcmask 162816   ;;  %vm85_vm2 = vcmask 261120   ;;  %vm88_vm3 = vcmask 257024   ;;  %s844_s1 = inlined_call_operand.vmem [shape: f32[20,32], index: 1, kind: input, shape index: {}]   ;;  %s845_s0 = inlined_call_operand.vmem [shape: f32[32,20], index: 0, kind: input, shape index: {}]   ;;  %s846_s4 = inlined_call_operand.vmem [shape: f32[5,64], index: 4, kind: input, shape index: {}]   ;;  %s847_s2 = inlined_call_operand.vmem [shape: f32[96,64], index: 2, kind: input, shape index: {}]   ;;  %s848_s3 = inlined_call_operand.vmem [shape: f32[512,64], index: 3, kind: input, shape index: {}]   ;;  %s849_s5 = inlined_call_operand.vmem [shape: f32[2,1], index: 5, kind: output, shape index: {}]  }
   0x1   :  { %v31_v0 = vld [vmem:[%s844_s1 + $0x10] sm:$0xf]  ;;  %v30_v1 = vld [vmem:[%s844_s1 + $0x8] sm:$0xff]  ;;  %v29_v2 = vld [vmem:[%s844_s1] sm:$0xff]  ;;  %v528_v7 = vmov 0.0   ;;  %vm212_vm4 = vcmask 523264  }
   0x2   :  { %495 = vmatpush.msk.msra.mxu0 %vm46_vm0, %v31_v0  ;;  %515 = vmatpush.msk.msra.mxu1 %vm46_vm0, %v31_v0  ;;  %v25_v3 = vld [vmem:[%s845_s0] sm:$0xff]  ;;  %v28_v4 = vld [vmem:[%s845_s0 + $0x18] sm:$0xff]  ;;  %v26_v5 = vld [vmem:[%s845_s0 + $0x8] sm:$0xff]  ;;  %87 = vst.msk [vmem:[#allocation2 + $0x8] sm:$0xff] %vm85_vm2, %v528_v7  ;;  %vm464_vm5 = vcmask 517120   ;;  %vm489_vm9 = vcmask 1024  }
   0x3   :  { %v27_v6 = vld [vmem:[%s845_s0 + $0x10] sm:$0xff]  ;;  %89 = vst.msk [vmem:[#allocation2 + $0x10] sm:$0xf] %vm88_vm3, %v528_v7  ;;  %v103_v8 = vld [vmem:[%s847_s2 + $0x38] sm:$0xff]  ;;  %v101_v10 = vld [vmem:[%s847_s2 + $0x28] sm:$0xff] }
   0x4   :  { %64 = vmatpush.msra.mxu0 %v30_v1  ;;  %516 = vmatpush.msra.mxu1 %v30_v1  ;;  %86 = vst.msk [vmem:[#allocation2] sm:$0xff] %vm85_vm2, %v528_v7  ;;  %v102_v9 = vld [vmem:[%s847_s2 + $0x30] sm:$0xff]  ;;  %v100_v11 = vld [vmem:[%s847_s2 + $0x20] sm:$0xff]  ;;  %v99_v12 = vld [vmem:[%s847_s2 + $0x18] sm:$0xff] }
   0x5   :  { %v165_v13 = vld [vmem:[%s847_s2 + $0x58] sm:$0xff]  ;;  %v98_v14 = vld [vmem:[%s847_s2 + $0x10] sm:$0xff]  ;;  %151 = vmatpush.msra.mxu2 %v99_v12  ;;  %v97_v16 = vld [vmem:[%s847_s2 + $0x8] sm:$0xff] }
   0x6   :  { %65 = vmatpush.msra.mxu0 %v29_v2  ;;  %517 = vmatpush.msra.mxu1 %v29_v2  ;;  %v164_v15 = vld [vmem:[%s847_s2 + $0x50] sm:$0xff]  ;;  %v163_v17 = vld [vmem:[%s847_s2 + $0x48] sm:$0xff]  ;;  %v96_v18 = vld [vmem:[%s847_s2] sm:$0xff] }
   0x7   :  { %496 = vmatmul.msk.f32.vlgmr.msra.gmra.mxu0 %vm33_vm1, %v25_v3  ;;  %499 = vmatmul.msk.f32.vlgmr.msra.gmra.mxu1 %vm33_vm1, %v28_v4  ;;  %v162_v19 = vld [vmem:[%s847_s2 + $0x40] sm:$0xff]  ;;  %v211_v39 = vld [vmem:[%s848_s3 + $0x38] sm:$0xff]  ;;  %v210_v40 = vld [vmem:[%s848_s3 + $0x30] sm:$0xff] }
   0x8   :  { %122 = vmatpush.msrb.mxu1 %v103_v8  ;;  %184 = vmatpush.msra.mxu3 %v165_v13  ;;  %v519_v22 = vld [vmem:[%s846_s4] ss:$0 sm:$0xff]  ;;  %v244_v41 = vld [vmem:[%s848_s3 + $0x78] sm:$0xff]  ;;  %v209_v44 = vld [vmem:[%s848_s3 + $0x28] sm:$0xff] }
   0x9   :  { %152 = vmatpush.msra.mxu2 %v98_v14  ;;  %v276_v42 = vld [vmem:[%s848_s3 + $0xb8] sm:$0xff]  ;;  %v243_v45 = vld [vmem:[%s848_s3 + $0x70] sm:$0xff]  ;;  %v242_v48 = vld [vmem:[%s848_s3 + $0x68] sm:$0xff] }
   0xa   :  { %123 = vmatpush.msrb.mxu1 %v102_v9  ;;  %185 = vmatpush.msra.mxu3 %v164_v15  ;;  %v308_v43 = vld [vmem:[%s848_s3 + $0xf8] sm:$0xff]  ;;  %v275_v46 = vld [vmem:[%s848_s3 + $0xb0] sm:$0xff]  ;;  %v274_v49 = vld [vmem:[%s848_s3 + $0xa8] sm:$0xff] }
   0xb   :  { %153 = vmatpush.msra.mxu2 %v97_v16  ;;  %320 = vmatpush.msrb.mxu0 %v308_v43  ;;  %v307_v47 = vld [vmem:[%s848_s3 + $0xf0] sm:$0xff]  ;;  %v208_v50 = vld [vmem:[%s848_s3 + $0x20] sm:$0xff]  ;;  %v306_v51 = vld [vmem:[%s848_s3 + $0xe8] sm:$0xff] }
   0xc   :  { %124 = vmatpush.msrb.mxu1 %v101_v10  ;;  %186 = vmatpush.msra.mxu3 %v163_v17  ;;  %v207_v52 = vld [vmem:[%s848_s3 + $0x18] sm:$0xff]  ;;  %v241_v53 = vld [vmem:[%s848_s3 + $0x60] sm:$0xff]  ;;  %v206_v56 = vld [vmem:[%s848_s3 + $0x10] sm:$0xff] }
   0xd   :  { %154 = vmatpush.msra.mxu2 %v96_v18  ;;  %321 = vmatpush.msrb.mxu0 %v307_v47  ;;  %v273_v54 = vld [vmem:[%s848_s3 + $0xa0] sm:$0xff]  ;;  %v240_v57 = vld [vmem:[%s848_s3 + $0x58] sm:$0xff]  ;;  %v205_v60 = vld [vmem:[%s848_s3 + $0x8] sm:$0xff] }
   0xe   :  { %125 = vmatpush.msrb.mxu1 %v100_v11  ;;  %187 = vmatpush.msra.mxu3 %v162_v19  ;;  %v305_v55 = vld [vmem:[%s848_s3 + $0xe0] sm:$0xff]  ;;  %v272_v58 = vld [vmem:[%s848_s3 + $0x98] sm:$0xff]  ;;  %v239_v61 = vld [vmem:[%s848_s3 + $0x50] sm:$0xff] }
   0xf   :  { %497 = vmatmul.msk.f32.gmra.mxu0 %vm33_vm1, %v26_v5  ;;  %256 = vmatpush.msrb.mxu2 %v244_v41  ;;  %v304_v59 = vld [vmem:[%s848_s3 + $0xd8] sm:$0xff]  ;;  %v271_v62 = vld [vmem:[%s848_s3 + $0x90] sm:$0xff]  ;;  %v204_v0 = vld [vmem:[%s848_s3] sm:$0xff] }
  0x10   :  { %224 = vmatpush.msra.mxu1 %v211_v39  ;;  %288 = vmatpush.msrb.mxu3 %v276_v42  ;;  %v303_v63 = vld [vmem:[%s848_s3 + $0xd0] sm:$0xff]  ;;  %v238_v1 = vld [vmem:[%s848_s3 + $0x48] sm:$0xff]  ;;  %v340_v4 = vld [vmem:[%s848_s3 + $0x138] sm:$0xff] }
  0x11   :  { %257 = vmatpush.msrb.mxu2 %v243_v45  ;;  %322 = vmatpush.msrb.mxu0 %v306_v51  ;;  %v270_v2 = vld [vmem:[%s848_s3 + $0x88] sm:$0xff]  ;;  %v237_v5 = vld [vmem:[%s848_s3 + $0x40] sm:$0xff]  ;;  %v339_v8 = vld [vmem:[%s848_s3 + $0x130] sm:$0xff] }
  0x12   :  { %225 = vmatpush.msra.mxu1 %v210_v40  ;;  %289 = vmatpush.msrb.mxu3 %v275_v46  ;;  %v302_v3 = vld [vmem:[%s848_s3 + $0xc8] sm:$0xff]  ;;  %v301_v7 = vld [vmem:[%s848_s3 + $0xc0] sm:$0xff]  ;;  %v372_v9 = vld [vmem:[%s848_s3 + $0x178] sm:$0xff] }
  0x13   :  { %258 = vmatpush.msrb.mxu2 %v242_v48  ;;  %323 = vmatpush.msrb.mxu0 %v305_v55  ;;  %v404_v10 = vld [vmem:[%s848_s3 + $0x1b8] sm:$0xff]  ;;  %v338_v12 = vld [vmem:[%s848_s3 + $0x128] sm:$0xff]  ;;  %v371_v13 = vld [vmem:[%s848_s3 + $0x170] sm:$0xff] }
  0x14   :  { %226 = vmatpush.msra.mxu1 %v209_v44  ;;  %290 = vmatpush.msrb.mxu3 %v274_v49  ;;  %v436_v11 = vld [vmem:[%s848_s3 + $0x1f8] sm:$0xff]  ;;  %v403_v14 = vld [vmem:[%s848_s3 + $0x1b0] sm:$0xff]  ;;  %v337_v16 = vld [vmem:[%s848_s3 + $0x120] sm:$0xff] }
  0x15   :  { %259 = vmatpush.msrb.mxu2 %v241_v53  ;;  %324 = vmatpush.msrb.mxu0 %v304_v59  ;;  %v435_v15 = vld [vmem:[%s848_s3 + $0x1f0] sm:$0xff]  ;;  %v370_v17 = vld [vmem:[%s848_s3 + $0x168] sm:$0xff]  ;;  %v520_v43 = vld [vmem:[%s846_s4 + $0x1] ss:$0 sm:$0xff] }
  0x16   :  { %227 = vmatpush.msra.mxu1 %v208_v50  ;;  %291 = vmatpush.msrb.mxu3 %v273_v54  ;;  %v402_v18 = vld [vmem:[%s848_s3 + $0x1a8] sm:$0xff] }
  0x17   :  { %498 = vmatmul.msk.f32.gmra.mxu0 %vm33_vm1, %v27_v6  ;;  %260 = vmatpush.msrb.mxu2 %v240_v57  ;;  %v269_v6 = vld [vmem:[%s848_s3 + $0x80] sm:$0xff]  ;;  %v434_v19 = vld [vmem:[%s848_s3 + $0x1e8] sm:$0xff] }
  0x18   :  { %228 = vmatpush.msra.mxu1 %v207_v52  ;;  %292 = vmatpush.msrb.mxu3 %v272_v58 }
  0x19   :  { %261 = vmatpush.msrb.mxu2 %v239_v61  ;;  %325 = vmatpush.msrb.mxu0 %v303_v63 }
  0x1a   :  { %229 = vmatpush.msra.mxu1 %v206_v56  ;;  %293 = vmatpush.msrb.mxu3 %v271_v62 }
  0x1b   :  { %262 = vmatpush.msrb.mxu2 %v238_v1  ;;  %326 = vmatpush.msrb.mxu0 %v302_v3 }
  0x1c   :  { %230 = vmatpush.msra.mxu1 %v205_v60  ;;  %294 = vmatpush.msrb.mxu3 %v270_v2  ;;  %v521_v60 = vld [vmem:[%s846_s4 + $0x2] ss:$0 sm:$0xff] }
  0x1d   :  { %263 = vmatpush.msrb.mxu2 %v237_v5  ;;  %327 = vmatpush.msrb.mxu0 %v301_v7 }
  0x1e   :  { %231 = vmatpush.msra.mxu1 %v204_v0  ;;  %295 = vmatpush.msrb.mxu3 %v269_v6 }
  0x1f   :  { %448 = vmatpush.msra.mxu0 %v436_v11 }
  0x21   :  { %449 = vmatpush.msra.mxu0 %v435_v15 }
  0x23   :  { %450 = vmatpush.msra.mxu0 %v434_v19 }
  0x84   :  { %v67_v20 = vpop.f32.mrf.mxu0  ;;  %v76_v21 = vpop.f32.mrf.mxu1 }
  0x85   :  { %v77_v23 = vadd.f32 %v519_v22, %v76_v21  ;;  %v68_v29 = vadd.f32 %v519_v22, %v67_v20  ;;  %v336_v20 = vld [vmem:[%s848_s3 + $0x118] sm:$0xff]  ;;  %v369_v21 = vld [vmem:[%s848_s3 + $0x160] sm:$0xff] }
  0x87   :  { %v82_v26 = vmax.f32 %v77_v23, 0.0  ;;  %v79_v32 = vmax.f32 %v68_v29, 0.0  ;;  %v433_v23 = vld [vmem:[%s848_s3 + $0x1e0] sm:$0xff]  ;;  %v367_v29 = vld [vmem:[%s848_s3 + $0x150] sm:$0xff] }
  0x88   :  { %451 = vmatpush.msra.mxu0 %v433_v23 }
  0x8c   :  { %v70_v24 = vpop.f32.mrf.mxu0 }
  0x8d   :  { %v71_v25 = vadd.f32 %v519_v22, %v70_v24  ;;  %v335_v24 = vld [vmem:[%s848_s3 + $0x110] sm:$0xff] }
  0x8f   :  { %v80_v27 = vmax.f32 %v71_v25, 0.0  ;;  %v368_v25 = vld [vmem:[%s848_s3 + $0x158] sm:$0xff] }
  0x91   :  { %v84_v28 = vmax.f32 %v80_v27, %v82_v26  ;;  %v400_v26 = vld [vmem:[%s848_s3 + $0x198] sm:$0xff] }
  0x92   :  { %v432_v27 = vld [vmem:[%s848_s3 + $0x1d8] sm:$0xff] }
  0x93   :  { %91 = vst.msk [vmem:[#allocation2 + $0xa] sm:$0xff] %vm85_vm2, %v84_v28  ;;  %452 = vmatpush.msra.mxu0 %v432_v27 }
  0x94   :  { %v73_v30 = vpop.f32.mrf.mxu0 }
  0x95   :  { %v74_v31 = vadd.f32 %v519_v22, %v73_v30  ;;  %v401_v22 = vld [vmem:[%s848_s3 + $0x1a0] sm:$0xff]  ;;  %v399_v30 = vld [vmem:[%s848_s3 + $0x190] sm:$0xff] }
  0x97   :  { %v81_v33 = vmax.f32 %v74_v31, 0.0  ;;  %v431_v31 = vld [vmem:[%s848_s3 + $0x1d0] sm:$0xff] }
  0x98   :  { %453 = vmatpush.msra.mxu0 %v431_v31 }
  0x99   :  { %v83_v34 = vmax.f32 %v79_v32, %v81_v33  ;;  %v333_v32 = vld [vmem:[%s848_s3 + $0x100] sm:$0xff]  ;;  %v366_v33 = vld [vmem:[%s848_s3 + $0x148] sm:$0xff] }
  0x9a   :  { %v95_v38 = vld [vmem:[#allocation2 + $0xc] sm:$0xff] }
  0x9b   :  { %90 = vst.msk [vmem:[#allocation2 + $0x2] sm:$0xff] %vm85_vm2, %v83_v34  ;;  %500 = vmatmul.msk.f32.vlgmr.msrb.gmra.mxu1 %vm85_vm2, %v83_v34  ;;  %v398_v34 = vld [vmem:[%s848_s3 + $0x188] sm:$0xff] }
  0x9c   :  { %352 = vmatpush.msrb.mxu1 %v340_v4 }
  0x9e   :  { %353 = vmatpush.msrb.mxu1 %v339_v8 }
  0xa0   :  { %354 = vmatpush.msrb.mxu1 %v338_v12 }
  0xa2   :  { %v92_v35 = vld [vmem:[#allocation2] sm:$0xff]  ;;  %v93_v37 = vld [vmem:[#allocation2 + $0x8] sm:$0xff]  ;;  %355 = vmatpush.msrb.mxu1 %v337_v16 }
  0xa3   :  { %v94_v36 = vld [vmem:[#allocation2 + $0x4] sm:$0xff]  ;;  %501 = vmatmul.msk.f32.gmra.mxu1 %vm85_vm2, %v84_v28  ;;  %502 = vmatmul.msk.f32.vlgmr.msra.gmra.mxu2 %vm85_vm2, %v92_v35 }
  0xa4   :  { %504 = vmatmul.msk.f32.vlgmr.msra.gmra.mxu3 %vm85_vm2, %v94_v36  ;;  %384 = vmatpush.msra.mxu2 %v372_v9  ;;  %v334_v28 = vld [vmem:[%s848_s3 + $0x108] sm:$0xff]  ;;  %v365_v36 = vld [vmem:[%s848_s3 + $0x140] sm:$0xff] }
  0xa5   :  { %416 = vmatpush.msra.mxu3 %v404_v10  ;;  %356 = vmatpush.msrb.mxu1 %v336_v20  ;;  %v430_v35 = vld [vmem:[%s848_s3 + $0x1c8] sm:$0xff] }
  0xa6   :  { %385 = vmatpush.msra.mxu2 %v371_v13  ;;  %454 = vmatpush.msra.mxu0 %v430_v35  ;;  %v522_v13 = vld [vmem:[%s846_s4 + $0x3] ss:$0 sm:$0xff] }
  0xa7   :  { %417 = vmatpush.msra.mxu3 %v403_v14  ;;  %357 = vmatpush.msrb.mxu1 %v335_v24 }
  0xa8   :  { %386 = vmatpush.msra.mxu2 %v370_v17  ;;  %v523_v17 = vld [vmem:[%s846_s4 + $0x4] ss:$0 sm:$0xff] }
  0xa9   :  { %418 = vmatpush.msra.mxu3 %v402_v18  ;;  %358 = vmatpush.msrb.mxu1 %v334_v28 }
  0xaa   :  { %387 = vmatpush.msra.mxu2 %v369_v21 }
  0xab   :  { %503 = vmatmul.msk.f32.gmra.mxu2 %vm85_vm2, %v93_v37  ;;  %419 = vmatpush.msra.mxu3 %v401_v22  ;;  %v397_v37 = vld [vmem:[%s848_s3 + $0x180] sm:$0xff] }
  0xac   :  { %505 = vmatmul.msk.f32.gmra.mxu3 %vm85_vm2, %v95_v38  ;;  %388 = vmatpush.msra.mxu2 %v368_v25  ;;  %v429_v38 = vld [vmem:[%s848_s3 + $0x1c0] sm:$0xff] }
  0xad   :  { %420 = vmatpush.msra.mxu3 %v400_v26  ;;  %359 = vmatpush.msrb.mxu1 %v333_v32 }
  0xae   :  { %389 = vmatpush.msra.mxu2 %v367_v29  ;;  %455 = vmatpush.msra.mxu0 %v429_v38 }
  0xaf   :  { %421 = vmatpush.msra.mxu3 %v399_v30 }
  0xb0   :  { %390 = vmatpush.msra.mxu2 %v366_v33 }
  0xb1   :  { %422 = vmatpush.msra.mxu3 %v398_v34 }
  0xb2   :  { %391 = vmatpush.msra.mxu2 %v365_v36 }
  0xb3   :  { %423 = vmatpush.msra.mxu3 %v397_v37 }
 0x118   :  { %v127_v39 = vpop.f32.mrf.mxu1 }
 0x120   :  { %v130_v47 = vpop.f32.mrf.mxu1 }
 0x126   :  { %v156_v40 = vpop.f32.mrf.mxu2 }
 0x127   :  { %v157_v41 = vadd.f32 %v156_v40, %v127_v39  ;;  %v189_v42 = vpop.f32.mrf.mxu3 }
 0x129   :  { %v195_v44 = vadd.f32 %v189_v42, %v157_v41 }
 0x12b   :  { %v198_v45 = vadd.f32 %v520_v43, %v195_v44 }
 0x12d   :  { %v200_v46 = vmax.f32 %v198_v45, 0.0 }
 0x12e   :  { %v159_v48 = vpop.f32.mrf.mxu2 }
 0x12f   :  { %v160_v49 = vadd.f32 %v159_v48, %v130_v47  ;;  %506 = vmatmul.msk.f32.vlgmr.msra.gmra.mxu1 %vm212_vm4, %v200_v46  ;;  %v245_v50 = vrot.slane %v200_v46, 2  ;;  %v277_v51 = vrot.slane %v200_v46, 4  ;;  %v309_v52 = vrot.slane %v200_v46, 6  ;;  %v192_v53 = vpop.f32.mrf.mxu3 }
 0x131   :  { %v196_v54 = vadd.f32 %v192_v53, %v160_v49  ;;  %507 = vmatmul.msk.f32.vlgmr.msrb.gmra.mxu2 %vm212_vm4, %v245_v50  ;;  %508 = vmatmul.msk.f32.vlgmr.msrb.gmra.mxu3 %vm212_vm4, %v277_v51 }
 0x132   :  { %509 = vmatmul.msk.f32.vlgmr.msrb.gmra.mxu0 %vm212_vm4, %v309_v52 }
 0x133   :  { %v199_v55 = vadd.f32 %v520_v43, %v196_v54 }
 0x135   :  { %v201_v56 = vmax.f32 %v199_v55, 0.0 }
 0x137   :  { %v373_v57 = vrot.slane %v201_v56, 2  ;;  %v405_v58 = vrot.slane %v201_v56, 4  ;;  %v437_v59 = vrot.slane %v201_v56, 6  ;;  %510 = vmatmul.msk.f32.vlgmr.msrb.gmra.mxu1 %vm212_vm4, %v201_v56 }
 0x139   :  { %511 = vmatmul.msk.f32.vlgmr.msra.gmra.mxu2 %vm212_vm4, %v373_v57  ;;  %512 = vmatmul.msk.f32.vlgmr.msra.gmra.mxu3 %vm212_vm4, %v405_v58 }
 0x13a   :  { %513 = vmatmul.msk.f32.vlgmr.msra.gmra.mxu0 %vm212_vm4, %v437_v59 }
 0x1ac   :  { %v233_v61 = vpop.f32.mrf.mxu1 }
 0x1ad   :  { %v236_v62 = vadd.f32 %v521_v60, %v233_v61 }
 0x1af   :  { %v329_v2 = vpop.f32.mrf.mxu0 }
 0x1b4   :  { %v265_v63 = vpop.f32.mrf.mxu2  ;;  %v297_v0 = vpop.f32.mrf.mxu3 }
 0x1b5   :  { %v268_v1 = vadd.f32 %v265_v63, %v236_v62  ;;  %v361_v5 = vpop.f32.mrf.mxu1 }
 0x1b7   :  { %v300_v3 = vadd.f32 %v297_v0, %v268_v1  ;;  %v457_v11 = vpop.f32.mrf.mxu0 }
 0x1b9   :  { %v332_v4 = vadd.f32 %v329_v2, %v300_v3 }
 0x1bb   :  { %v364_v6 = vadd.f32 %v361_v5, %v332_v4 }
 0x1bc   :  { %v393_v7 = vpop.f32.mrf.mxu2  ;;  %v425_v9 = vpop.f32.mrf.mxu3 }
 0x1bd   :  { %v396_v8 = vadd.f32 %v393_v7, %v364_v6 }
 0x1bf   :  { %v428_v10 = vadd.f32 %v425_v9, %v396_v8 }
 0x1c1   :  { %v460_v12 = vadd.f32 %v457_v11, %v428_v10 }
 0x1c3   :  { %v461_v14 = vmax.f32 %v460_v12, 0.0 }
 0x1c5   :  { %v463_v15 = vmul.f32 %v522_v13, %v461_v14 }
 0x1c7   :  { %v465_v16 = vsel %vm464_vm5, %v463_v15, 0.0 }
 0x1c8   :  { %466 = vadd.xlane.f32.xlu0 %v465_v16 }
 0x23b   :  { %v467_v18 = vpop.xlane.xlu0 %466 }
 0x23c   :  { %v469_v19 = vadd.f32 %v523_v17, %v467_v18 }
 0x23e   :  { %v514_v20 = vmul.f32 -1.442695, %v469_v19 }
 0x240   :  { %524 = vpow2.f32 %v514_v20 }
 0x246   :  { %v525_v21 = vpop.eup %524 }
 0x247   :  { %v473_v22 = vadd.f32 1.0, %v525_v21 }
 0x249   :  { %526 = vrcp.f32 %v473_v22  ;;  %v485_v26 = vand.u32 2147483648, %v473_v22  ;;  %v483_v28 = vand.u32 2147483647, %v473_v22  ;;  %vm479_vm7 = vweird.f32 %v473_v22 }
 0x24b   :  { %v486_v30 = vor.u32 1.1754944e-38, %v485_v26  ;;  %vm484_vm10 = vcmp.eq.f32.partialorder %v483_v28, 8.507059e+37 }
 0x24f   :  { %v527_v23 = vpop.eup %526 }
 0x250   :  { %v475_v24 = vmul.f32 %v527_v23, %v473_v22  ;;  %vm480_vm6 = vweird.f32 %v527_v23 }
 0x251   :  { %vm481_vm8 = vmor %vm479_vm7, %vm480_vm6 }
 0x252   :  { %v476_v25 = vsub.f32 1.0, %v475_v24 }
 0x254   :  { %v477_v27 = vmul.f32 %v527_v23, %v476_v25 }
 0x256   :  { %v478_v29 = vadd.f32 %v527_v23, %v477_v27 }
 0x258   :  { %v482_v31 = vsel %vm481_vm8, %v527_v23, %v478_v29 }
 0x259   :  { %v487_v32 = vsel %vm484_vm10, %v486_v30, %v482_v31 }
 0x25a   :  { %490 = vst.msk [vmem:[%s849_s5] sm:$0x3] %vm489_vm9, %v487_v32 }

</bundles_post_ra>
